<compile_context>
chip_gen: v5e
topology: v5e:2x2
jax: 0.10.0
libtpu: 0.0.40
codegen_flags: <defaults>
</compile_context>

<pallas_src>
import jax
import jax.numpy as jnp
from jax.experimental import pallas as pl
from jax.experimental.pallas import tpu as pltpu


# ----------------------------------------------------------------------------
# one_hot == True branch: y = labels @ W^T + b
# ----------------------------------------------------------------------------
def _label_linear_kernel(x_ref, wt_ref, b_ref, o_ref):
    y = jnp.dot(x_ref[...], wt_ref[...], preferred_element_type=jnp.float32)
    o_ref[...] = (y + b_ref[...]).astype(o_ref.dtype)


def label_mapping_one_hot(labels, w, b):
    """labels: (B, label_dim) float32, w: (latent_dim, label_dim), b: (latent_dim,)."""
    B, _ = labels.shape
    L = w.shape[0]
    wt = w.T                       # (label_dim, latent_dim) -> lane axis = latent_dim
    br = b.reshape(1, L)

    vmem = pl.BlockSpec(memory_space=pltpu.MemorySpace.VMEM)
    return pl.pallas_call(
        _label_linear_kernel,
        out_shape=jax.ShapeDtypeStruct((B, L), jnp.float32),
        in_specs=[vmem, vmem, vmem],
        out_specs=vmem,
    )(labels, wt, br)


# ----------------------------------------------------------------------------
# one_hot == False branch: y = embedding_table[labels]
# ----------------------------------------------------------------------------
def _label_embedding_kernel(ids_ref, emb_ref, o_ref):
    ids = ids_ref[...]                                   # (B, 1) int32
    B = ids.shape[0]
    C = emb_ref.shape[0]
    # Row gather expressed as a one-hot matmul: avoids a per-row grid (and its
    # per-step overhead) and keeps the whole lookup inside one kernel call.
    iota = jax.lax.broadcasted_iota(jnp.int32, (B, C), 1)
    onehot = (iota == ids).astype(jnp.float32)           # (B, C)
    y = jnp.dot(onehot, emb_ref[...], preferred_element_type=jnp.float32)
    o_ref[...] = y.astype(o_ref.dtype)


def label_mapping_embedding(labels, emb_table):
    """labels: (B,) int32, emb_table: (num_classes, latent_dim)."""
    B = labels.shape[0]
    L = emb_table.shape[1]
    ids2d = labels.astype(jnp.int32).reshape(B, 1)

    vmem = pl.BlockSpec(memory_space=pltpu.MemorySpace.VMEM)
    return pl.pallas_call(
        _label_embedding_kernel,
        out_shape=jax.ShapeDtypeStruct((B, L), jnp.float32),
        in_specs=[vmem, vmem],
        out_specs=vmem,
    )(ids2d, emb_table)


# ----------------------------------------------------------------------------
# Top-level wrapper mirroring Label_mapping.forward
# ----------------------------------------------------------------------------
def label_mapping_forward(labels, *, one_hot, fcl_w=None, fcl_b=None, emb_table=None):
    if one_hot:
        return label_mapping_one_hot(labels, fcl_w, fcl_b)
    return label_mapping_embedding(labels, emb_table)


# ----------------------------------------------------------------------------
# Deterministic init helpers (mimic PyTorch defaults)
# ----------------------------------------------------------------------------
def _init_linear(key, out_features, in_features):
    kw, kb = jax.random.split(key)
    bound = 1.0 / jnp.sqrt(jnp.float32(in_features))
    w = jax.random.uniform(kw, (out_features, in_features), jnp.float32, -bound, bound)
    b = jax.random.uniform(kb, (out_features,), jnp.float32, -bound, bound)
    return w, b


def _init_embedding(key, num_classes, latent_dim):
    # nn.Embedding default init: N(0, 1)
    return jax.random.normal(key, (num_classes, latent_dim), jnp.float32)


if __name__ == "__main__":
    batch = 8
    label_dim = 16
    latent_dim = 32
    num_classes = 10

    key = jax.random.PRNGKey(0)
    k_lin, k_emb, k_cls = jax.random.split(key, 3)

    # ---- one_hot = True branch ----------------------------------------------
    fcl_w, fcl_b = _init_linear(k_lin, latent_dim, label_dim)        # Linear(label_dim, latent_dim)
    classes = jax.random.randint(k_cls, (batch,), 0, label_dim)
    labels_1h = jax.nn.one_hot(classes % label_dim, label_dim, dtype=jnp.float32)  # (B, label_dim)

    y_lin = label_mapping_forward(labels_1h, one_hot=True, fcl_w=fcl_w, fcl_b=fcl_b)
    y_lin = jax.block_until_ready(y_lin)
    ref_lin = labels_1h @ fcl_w.T + fcl_b
    assert y_lin.shape == (batch, latent_dim)
    assert jnp.allclose(y_lin, ref_lin, atol=1e-5, rtol=1e-5)

    # ---- one_hot = False branch (embedding lookup) ---------------------------
    emb_table = _init_embedding(k_emb, num_classes, latent_dim)      # Embedding(num_classes, latent_dim)
    labels_int = jax.random.randint(k_cls, (batch,), 0, num_classes).astype(jnp.int32)

    y_emb = label_mapping_forward(labels_int, one_hot=False, emb_table=emb_table)
    y_emb = jax.block_until_ready(y_emb)
    ref_emb = emb_table[labels_int]
    assert y_emb.shape == (batch, latent_dim)
    assert jnp.allclose(y_emb, ref_emb, atol=1e-5, rtol=1e-5)

    print("KERNEL_OK")
</pallas_src>

<mosaic_0001>
module attributes {stable_mosaic.version = 11 : i64} {
  func.func @_label_linear_kernel(%arg0: memref<8x16xf32, #tpu.memory_space<vmem>>, %arg1: memref<16x32xf32, #tpu.memory_space<vmem>>, %arg2: memref<1x32xf32, #tpu.memory_space<vmem>>, %arg3: memref<8x32xf32, #tpu.memory_space<vmem>>) attributes {dimension_semantics = [], scalar_prefetch = 0 : i64, scratch_operands = 0 : i64, tpu.core_type = #tpu.core_type<tc>} {
    %c0 = arith.constant 0 : index
    %c0_0 = arith.constant 0 : index
    %0 = vector.load %arg0[%c0, %c0_0] : memref<8x16xf32, #tpu.memory_space<vmem>>, vector<8x16xf32>
    %c0_1 = arith.constant 0 : index
    %c0_2 = arith.constant 0 : index
    %1 = vector.load %arg1[%c0_1, %c0_2] : memref<16x32xf32, #tpu.memory_space<vmem>>, vector<16x32xf32>
    %cst = arith.constant dense<0.000000e+00> : vector<8x32xf32>
    %2 = tpu.matmul %0, %1, %cst {dimension_numbers = #tpu.dot_dimension_numbers<[1], [0], [0], [1], [0, 0, 1, 1], [], []>} : vector<8x16xf32>, vector<16x32xf32>, vector<8x32xf32> -> vector<8x32xf32>
    %c0_3 = arith.constant 0 : index
    %c0_4 = arith.constant 0 : index
    %3 = vector.load %arg2[%c0_3, %c0_4] : memref<1x32xf32, #tpu.memory_space<vmem>>, vector<1x32xf32>
    %4 = vector.broadcast %3 : vector<1x32xf32> to vector<8x32xf32>
    %5 = arith.addf %2, %4 : vector<8x32xf32>
    %c0_5 = arith.constant 0 : index
    %c0_6 = arith.constant 0 : index
    %6 = vector.load %arg3[%c0_5, %c0_6] : memref<8x32xf32, #tpu.memory_space<vmem>>, vector<8x32xf32>
    tpu.vector_store %arg3[%c0_5, %c0_6], %5 {strides = array<i32>} : memref<8x32xf32, #tpu.memory_space<vmem>>, vector<8x32xf32>,
    return
  }
}

</mosaic_0001>

<bundles_post_ra>
// kernel: tpu_custom_call.1
= control target key start
LH: loop header
LB: loop body
LE: loop exit
PB: predicated region body
PF: predicated region fallthrough
CT: control target
= control target key end

     0   :  { %8 = vsyncpa [#allocation3], 0  ;;  %s218_s0 = inlined_call_operand.hbm [shape: f32[8,16], index: 0, kind: input, shape index: {}]   ;;  %s219_s1 = inlined_call_operand.hbm [shape: f32[16,32], index: 1, kind: input, shape index: {}]   ;;  %s220_s2 = inlined_call_operand.vmem [shape: f32[1,32], index: 2, kind: input, shape index: {}]   ;;  %s221_s3 = inlined_call_operand.hbm [shape: f32[8,32], index: 3, kind: output, shape index: {}]  }
   0x1   :  { %9 = vsyncpa [#allocation6], 0 }
   0x2   :  { %10 = vsyncpa [#allocation4], 0  ;;  %s16_s14 = sshll.u32 %s218_s0, 4  ;;  %s181_s15 = smov [#allocation2]   ;;  %s17_s14 = int_to_ptr.hbm [resolvable:$true] %s16_s14 }
   0x3   :  { %s18_s16 = sshll.u32 %s181_s15, 4  ;;  %s26_s19 = sshll.u32 %s219_s1, 4  ;;  %s19_s16 = int_to_ptr.vmem [resolvable:$true] %s18_s16  ;;  %s27_s19 = int_to_ptr.hbm [resolvable:$true] %s26_s19 }
   0x4   :  { %21 = dma.hbm_to_vmem [thread:$0]  %s17_s14, 128, %s19_s16, [#allocation3]  }
   0x5   :  { %s182_s20 = smov [#allocation5]   ;;  %s183_s22 = smov 128  }
   0x6   :  { %s28_s21 = sshll.u32 %s182_s20, 4  ;;  %s184_s23 = smov 8   ;;  %s29_s21 = int_to_ptr.vmem [resolvable:$true] %s28_s21 }
   0x7   :  { %34 = dma.hbm_to_vmem [thread:$0]  %s27_s19, 256, %s29_s21, [#allocation6], %s183_s22, %s183_s22, %s184_s23  }
   0x8   :  { %175 = dma.done.wait [#allocation3], 128  }
   0x9   :  { %176 = vsyncadd [#allocation3], 4294967168 }
   0xa   :  { %177 = dma.done.wait [#allocation6], 256  }
   0xb   :  { %178 = vsyncadd [#allocation6], 4294967040  ;;  %v47_v0 = vld [vmem:[#allocation5 + $0x8] sm:$0xff]  ;;  %v46_v1 = vld [vmem:[#allocation5] sm:$0xff]  ;;  %vm52_vm0 = vcmask 130048   ;;  %s185_s24 = smov [#allocation7]  }
   0xc   :  { %70 = vmatpush.msra.mxu0 %v47_v0  ;;  %v45_v2 = vld [vmem:[#allocation2] sm:$0xff]  ;;  %s83_s25 = sshll.u32 %s185_s24, 4  ;;  %s85_s28 = sshll.u32 %s221_s3, 4  ;;  %vm76_vm1 = vcmask 261120   ;;  %s84_s25 = int_to_ptr.vmem [resolvable:$true] %s83_s25  ;;  %s86_s28 = int_to_ptr.hbm [resolvable:$true] %s85_s28 }
   0xd   :  { %v102_v3 = vld [vmem:[%s220_s2] ss:$0 sm:$0xff] }
   0xe   :  { %71 = vmatpush.msra.mxu0 %v46_v1 }
   0xf   :  { %96 = vmatmul.msk.f32.vlgmr.msra.gmra.mxu0 %vm52_vm0, %v45_v2 }
  0x8c   :  { %v73_v4 = vpop.f32.mrf.mxu0 }
  0x8d   :  { %v74_v5 = vadd.f32 %v102_v3, %v73_v4 }
  0x8f   :  { %77 = vst.msk [vmem:[#allocation7] sm:$0xff] %vm76_vm1, %v74_v5 }
  0x90   :  { %88 = dma.vmem_to_hbm [thread:$0]  %s84_s25, 128, %s86_s28, [#allocation4]  }
  0x91   :  { %179 = dma.done.wait [#allocation4], 128  }
  0x92   :  { %180 = vsyncadd [#allocation4], 4294967168 }
  0x93   :  { %93 = vsyncpa [#allocation3], 1 }
  0x94   :  { %94 = vsyncpa [#allocation6], 1 }
  0x95   :  { %95 = vsyncpa [#allocation4], 1 }

</bundles_post_ra>
